<compile_context>
chip_gen: v5e
topology: v5e:2x2
jax: 0.10.0
libtpu: 0.0.40
codegen_flags: <defaults>
</compile_context>

<pallas_src>
import jax
import jax.numpy as jnp
from jax.experimental import pallas as pl
from jax.experimental.pallas import tpu as pltpu


def _round_up(x, m):
    return (x + m - 1) // m * m


def _discriminator_kernel(wc_ref, b_ref, hpl_ref, hmi_ref, out_ref):
    # wc_ref:  (1, n_h)      f32 VMEM, same block every grid step (resident)
    # b_ref:   (1, 1)        f32 SMEM scalar bias
    # hpl_ref: (TILE_N, n_h) native dtype VMEM tile
    # hmi_ref: (TILE_N, n_h) native dtype VMEM tile
    # out_ref: (TILE_N, 2)   f32 VMEM tile
    wc = wc_ref[...]                                  # (1, n_h) f32
    b = b_ref[0, 0]

    hpl = hpl_ref[...].astype(jnp.float32)            # upcast in-kernel (bf16 on the wire)
    hmi = hmi_ref[...].astype(jnp.float32)

    # Per-row bilinear score: <h[n], W c> + b, f32 accumulation.
    sc1 = jnp.sum(hpl * wc, axis=-1, keepdims=True) + b   # (TILE_N, 1)
    sc2 = jnp.sum(hmi * wc, axis=-1, keepdims=True) + b   # (TILE_N, 1)

    # Direct slice stores (no jnp.concatenate / extra lane shuffle).
    out_ref[:, 0:1] = sc1
    out_ref[:, 1:2] = sc2


def discriminator_forward(c, h_pl, h_mi, W, bias,
                          s_bias1=None, s_bias2=None, tile_n=None):
    """c: (n_h,), h_pl/h_mi: (N, n_h) any float dtype, W: (n_h, n_h), bias: scalar.

    Returns logits (N, 2) float32, matching nn.Bilinear + cat semantics.
    """
    N, n_h = h_pl.shape

    # Hoist the tiny O(n_h^2) matvec out of the per-tile path.
    wc = jnp.dot(W.astype(jnp.float32), c.astype(jnp.float32)).reshape(1, n_h)
    b2d = jnp.asarray(bias, jnp.float32).reshape(1, 1)

    # Row tile: multiple of 8 (sublane), modest default that fits the default
    # scoped VMEM on v5e (16 MiB) / v6e / v7x (32 MiB) with double buffering
    # even at large n_h; the kernel is HBM-bandwidth bound so bigger tiles
    # mostly just amortize the ~0.35 us/step grid overhead.
    if tile_n is None:
        tile_n = min(512, _round_up(N, 8))
    tile_n = _round_up(max(tile_n, 8), 8)
    n_pad = _round_up(N, tile_n)
    if n_pad != N:
        pad = ((0, n_pad - N), (0, 0))
        h_pl = jnp.pad(h_pl, pad)
        h_mi = jnp.pad(h_mi, pad)
    grid = (n_pad // tile_n,)

    in_bytes = jnp.dtype(h_pl.dtype).itemsize
    cost = pl.CostEstimate(
        flops=4 * n_pad * n_h,
        transcendentals=0,
        bytes_accessed=2 * n_pad * n_h * in_bytes + n_pad * 2 * 4 + n_h * 4,
    )

    out = pl.pallas_call(
        _discriminator_kernel,
        out_shape=jax.ShapeDtypeStruct((n_pad, 2), jnp.float32),
        grid=grid,
        in_specs=[
            pl.BlockSpec((1, n_h), lambda i: (0, 0)),            # wc (resident)
            pl.BlockSpec(memory_space=pltpu.MemorySpace.SMEM),   # bias scalar
            pl.BlockSpec((tile_n, n_h), lambda i: (i, 0)),       # h_pl row tile
            pl.BlockSpec((tile_n, n_h), lambda i: (i, 0)),       # h_mi row tile
        ],
        out_specs=pl.BlockSpec((tile_n, 2), lambda i: (i, 0)),
        compiler_params=pltpu.CompilerParams(
            dimension_semantics=("parallel",),   # shard row tiles across TCs (v7x)
        ),
        cost_estimate=cost,
    )(wc, b2d, h_pl, h_mi)

    logits = out[:N]
    # Optional s_bias1 / s_bias2 from the PyTorch forward: tiny (N,)-sized adds,
    # applied in the wrapper (plain XLA) to keep the kernel signature fixed.
    if s_bias1 is not None:
        logits = logits.at[:, 0].add(jnp.asarray(s_bias1, jnp.float32).reshape(-1))
    if s_bias2 is not None:
        logits = logits.at[:, 1].add(jnp.asarray(s_bias2, jnp.float32).reshape(-1))
    return logits


def reference_forward(c, h_pl, h_mi, W, bias):
    wc = W.astype(jnp.float32) @ c.astype(jnp.float32)           # (n_h,)
    sc1 = h_pl.astype(jnp.float32) @ wc + bias                    # (N,)
    sc2 = h_mi.astype(jnp.float32) @ wc + bias
    return jnp.stack([sc1, sc2], axis=1)                          # (N, 2)


if __name__ == "__main__":
    n_h = 32   # hidden dim of the bilinear
    N = 16     # number of nodes / rows

    key = jax.random.PRNGKey(0)
    k_c, k_pl, k_mi, k_w = jax.random.split(key, 4)

    c = jax.random.normal(k_c, (n_h,), dtype=jnp.float32)
    h_pl = jax.random.normal(k_pl, (N, n_h), dtype=jnp.float32)
    h_mi = jax.random.normal(k_mi, (N, n_h), dtype=jnp.float32)

    # Deterministic xavier_uniform_ init for the bilinear weight (1, n_h, n_h):
    # fan_in = n_h * n_h, fan_out = 1 * n_h  ->  bound = sqrt(6 / (fan_in + fan_out))
    bound = (6.0 / (n_h * n_h + n_h)) ** 0.5
    W = jax.random.uniform(k_w, (n_h, n_h), minval=-bound, maxval=bound,
                           dtype=jnp.float32)
    bias = jnp.float32(0.0)   # bias.data.fill_(0.0)

    # 1) f32 inputs, single tile (grid=(1,))
    logits = jax.block_until_ready(discriminator_forward(c, h_pl, h_mi, W, bias))
    ref = reference_forward(c, h_pl, h_mi, W, bias)
    assert logits.shape == (N, 2)
    assert jnp.allclose(logits, ref, atol=1e-4, rtol=1e-4)

    # 2) bf16 inputs on the wire (no wrapper upcast), multi-tile grid + row padding.
    h_pl_bf = h_pl.astype(jnp.bfloat16)
    h_mi_bf = h_mi.astype(jnp.bfloat16)
    logits_bf = jax.block_until_ready(
        discriminator_forward(c, h_pl_bf, h_mi_bf, W, bias, tile_n=8))
    ref_bf = reference_forward(c, h_pl_bf, h_mi_bf, W, bias)
    assert logits_bf.shape == (N, 2)
    assert jnp.allclose(logits_bf, ref_bf, atol=1e-4, rtol=1e-4)

    print("KERNEL_OK")
</pallas_src>

<mosaic_0001>
module attributes {stable_mosaic.version = 11 : i64} {
  func.func @_discriminator_kernel(%arg0: i32, %arg1: memref<1x32xf32, #tpu.memory_space<vmem>>, %arg2: memref<1x1xf32, #tpu.memory_space<smem>>, %arg3: memref<16x32xf32, #tpu.memory_space<vmem>>, %arg4: memref<16x32xf32, #tpu.memory_space<vmem>>, %arg5: memref<16x2xf32, #tpu.memory_space<vmem>>) attributes {dimension_semantics = [#tpu.dimension_semantics<parallel>], iteration_bounds = array<i64: 1>, scalar_prefetch = 0 : i64, scratch_operands = 0 : i64, tpu.core_type = #tpu.core_type<tc>, window_params = [{pipeline_mode = #tpu.pipeline_mode<synchronous>, transform_indices = @transform_0, window_bounds = array<i64: 1, 32>}, {transform_indices = @transform_1, window_bounds = array<i64: 1, 1>}, {transform_indices = @transform_2, window_bounds = array<i64: 16, 32>}, {transform_indices = @transform_3, window_bounds = array<i64: 16, 32>}, {transform_indices = @transform_4, window_bounds = array<i64: 16, 2>}]} {
    %c0 = arith.constant 0 : index
    %c0_0 = arith.constant 0 : index
    %0 = vector.load %arg1[%c0, %c0_0] : memref<1x32xf32, #tpu.memory_space<vmem>>, vector<1x32xf32>
    %c0_1 = arith.constant 0 : index
    %c0_2 = arith.constant 0 : index
    %1 = memref.load %arg2[%c0_1, %c0_2] : memref<1x1xf32, #tpu.memory_space<smem>>
    %c0_3 = arith.constant 0 : index
    %c0_4 = arith.constant 0 : index
    %2 = vector.load %arg3[%c0_3, %c0_4] : memref<16x32xf32, #tpu.memory_space<vmem>>, vector<16x32xf32>
    %c0_5 = arith.constant 0 : index
    %c0_6 = arith.constant 0 : index
    %3 = vector.load %arg4[%c0_5, %c0_6] : memref<16x32xf32, #tpu.memory_space<vmem>>, vector<16x32xf32>
    %4 = vector.broadcast %0 : vector<1x32xf32> to vector<16x32xf32>
    %5 = arith.mulf %2, %4 : vector<16x32xf32>
    %cst = arith.constant dense<0.000000e+00> : vector<16xf32>
    %6 = vector.multi_reduction <add>, %5, %cst [1] : vector<16x32xf32> to vector<16xf32>
    %7 = vector.shape_cast %6 : vector<16xf32> to vector<16x1xf32>
    %8 = vector.broadcast %1 : f32 to vector<16x1xf32>
    %9 = arith.addf %7, %8 : vector<16x1xf32>
    %10 = vector.broadcast %0 : vector<1x32xf32> to vector<16x32xf32>
    %11 = arith.mulf %3, %10 : vector<16x32xf32>
    %cst_7 = arith.constant dense<0.000000e+00> : vector<16xf32>
    %12 = vector.multi_reduction <add>, %11, %cst_7 [1] : vector<16x32xf32> to vector<16xf32>
    %13 = vector.shape_cast %12 : vector<16xf32> to vector<16x1xf32>
    %14 = vector.broadcast %1 : f32 to vector<16x1xf32>
    %15 = arith.addf %13, %14 : vector<16x1xf32>
    %c0_8 = arith.constant 0 : index
    %c0_9 = arith.constant 0 : index
    %16 = vector.load %arg5[%c0_8, %c0_9] : memref<16x2xf32, #tpu.memory_space<vmem>>, vector<16x1xf32>
    tpu.vector_store %arg5[%c0_8, %c0_9], %9 {strides = array<i32>} : memref<16x2xf32, #tpu.memory_space<vmem>>, vector<16x1xf32>,
    %c0_10 = arith.constant 0 : index
    %c1 = arith.constant 1 : index
    %17 = vector.load %arg5[%c0_10, %c1] : memref<16x2xf32, #tpu.memory_space<vmem>>, vector<16x1xf32>
    tpu.vector_store %arg5[%c0_10, %c1], %15 {strides = array<i32>} : memref<16x2xf32, #tpu.memory_space<vmem>>, vector<16x1xf32>,
    return
  }
  func.func @transform_0(%arg0: i32) -> (i32, i32) {
    %c0_i32 = arith.constant 0 : i32
    %c0_i32_0 = arith.constant 0 : i32
    %c0_i32_1 = arith.constant 0 : i32
    return %c0_i32, %c0_i32_0 : i32, i32
  }
  func.func @transform_1(%arg0: i32) -> (i32, i32) {
    %c0_i32 = arith.constant 0 : i32
    %c0_i32_0 = arith.constant 0 : i32
    %c0_i32_1 = arith.constant 0 : i32
    return %c0_i32, %c0_i32_0 : i32, i32
  }
  func.func @transform_2(%arg0: i32) -> (i32, i32) {
    %c0_i32 = arith.constant 0 : i32
    %c0_i32_0 = arith.constant 0 : i32
    return %arg0, %c0_i32 : i32, i32
  }
  func.func @transform_3(%arg0: i32) -> (i32, i32) {
    %c0_i32 = arith.constant 0 : i32
    %c0_i32_0 = arith.constant 0 : i32
    return %arg0, %c0_i32 : i32, i32
  }
  func.func @transform_4(%arg0: i32) -> (i32, i32) {
    %c0_i32 = arith.constant 0 : i32
    %c0_i32_0 = arith.constant 0 : i32
    return %arg0, %c0_i32 : i32, i32
  }
}

</mosaic_0001>

<bundles_post_ra>
// kernel: tpu_custom_call.1
= control target key start
LH: loop header
LB: loop body
LE: loop exit
PB: predicated region body
PF: predicated region fallthrough
CT: control target
= control target key end

     0   :  { %10 = vsyncpa [#allocation4], 0  ;;  %s203_s0 = inlined_call_operand.vmem [shape: f32[1,32], index: 0, kind: input, shape index: {}]   ;;  %s204_s1 = inlined_call_operand.<no memory space> [shape: f32[1,1], index: 1, kind: input, shape index: {}]   ;;  %s205_s2 = inlined_call_operand.hbm [shape: f32[16,32], index: 2, kind: input, shape index: {}]   ;;  %s206_s3 = inlined_call_operand.hbm [shape: f32[16,32], index: 3, kind: input, shape index: {}]   ;;  %s207_s4 = inlined_call_operand.vmem [shape: f32[16,2], index: 4, kind: output, shape index: {}]  }
   0x1   :  { %s20_s17 = sshll.u32 %s205_s2, 4  ;;  %s21_s17 = int_to_ptr.hbm [resolvable:$true] %s20_s17 }
   0x2   :  { %11 = vsyncpa [#allocation6], 0  ;;  %s150_s18 = smov [#allocation3]   ;;  %s33_s22 = sshll.u32 %s206_s3, 4  ;;  %s34_s22 = int_to_ptr.hbm [resolvable:$true] %s33_s22 }
   0x3   :  { %s22_s19 = sshll.u32 %s150_s18, 4  ;;  %s151_s23 = smov 128   ;;  %s23_s19 = int_to_ptr.vmem [resolvable:$true] %s22_s19 }
   0x4   :  { %s152_s24 = smov 8   ;;  %s153_s25 = smov [#allocation5]  }
   0x5   :  { %28 = dma.hbm_to_vmem [thread:$0]  %s21_s17, 256, %s23_s19, [#allocation4], %s151_s23, %s151_s23, %s152_s24  }
   0x6   :  { %s35_s26 = sshll.u32 %s153_s25, 4  ;;  %s36_s26 = int_to_ptr.vmem [resolvable:$true] %s35_s26 }
   0x7   :  { %41 = dma.hbm_to_vmem [thread:$0]  %s34_s22, 256, %s36_s26, [#allocation6], %s151_s23, %s151_s23, %s152_s24  }
   0x8   :  { %146 = dma.done.wait [#allocation4], 256  }
   0x9   :  { %147 = vsyncadd [#allocation4], 4294967040 }
   0xa   :  { %148 = dma.done.wait [#allocation6], 256  }
   0xb   :  { %149 = vsyncadd [#allocation6], 4294967040  ;;  %v52_v0 = vld [vmem:[#allocation3] sm:$0xff]  ;;  %vm61_vm0 = vcmask 261120   ;;  %v54_v2 = vld [vmem:[#allocation5] sm:$0xff]  ;;  %v68_v13 = vstv %s204_s1  ;;  %vm81_vm1 = vcmask 7168  }
   0xc   :  { %v97_v1 = vld [vmem:[%s203_s0] ss:$0 sm:$0xff]  ;;  %v53_v5 = vld [vmem:[#allocation3 + $0x8] sm:$0xff]  ;;  %v55_v6 = vld [vmem:[#allocation5 + $0x8] sm:$0xff]  ;;  %vm84_vm2 = vcmask 15368  }
   0xd   :  { %v59_v3 = vmul.f32 %v97_v1, %v52_v0  ;;  %v71_v4 = vmul.f32 %v97_v1, %v54_v2  ;;  %v60_v9 = vmul.f32 %v97_v1, %v53_v5  ;;  %v72_v10 = vmul.f32 %v97_v1, %v55_v6 }
   0xf   :  { %v62_v7 = vsel %vm61_vm0, %v59_v3, 0.0  ;;  %v73_v8 = vsel %vm61_vm0, %v71_v4, 0.0  ;;  %v65_v11 = vsel %vm61_vm0, %v60_v9, 0.0  ;;  %v76_v12 = vsel %vm61_vm0, %v72_v10, 0.0 }
  0x10   :  { %63 = vadd.xlane.f32.xlu0 %v62_v7  ;;  %74 = vadd.xlane.f32.xlu1 %v73_v8 }
  0x18   :  { %66 = vadd.xlane.f32.xlu0 %v65_v11  ;;  %77 = vadd.xlane.f32.xlu1 %v76_v12 }
  0x83   :  { %v64_v14 = vpop.xlane.xlu0 %63  ;;  %v75_v15 = vpop.xlane.xlu1 %74 }
  0x84   :  { %v69_v16 = vadd.f32 %v68_v13, %v64_v14  ;;  %v79_v17 = vadd.f32 %v75_v15, %v68_v13 }
  0x86   :  { %82 = vst.msk [vmem:[%s207_s4] sm:$0xff] %vm81_vm1, %v69_v16 }
  0x87   :  { %85 = vst.msk [vmem:[%s207_s4] sm:$0xff] %vm84_vm2, %v79_v17 }
  0x8b   :  { %v67_v18 = vpop.xlane.xlu0 %66  ;;  %v78_v19 = vpop.xlane.xlu1 %77 }
  0x8c   :  { %v70_v20 = vadd.f32 %v68_v13, %v67_v18  ;;  %v80_v21 = vadd.f32 %v78_v19, %v68_v13 }
  0x8e   :  { %83 = vst.msk [vmem:[%s207_s4 + $0x8] sm:$0xff] %vm81_vm1, %v70_v20 }
  0x8f   :  { %86 = vst.msk [vmem:[%s207_s4 + $0x8] sm:$0xff] %vm84_vm2, %v80_v21 }
  0x90   :  { %91 = vsyncpa [#allocation4], 1 }
  0x91   :  { %92 = vsyncpa [#allocation6], 1 }

</bundles_post_ra>
